<compile_context>
chip_gen: v6e
topology: v6e:2x2x1
jax: 0.10.0
libtpu: 0.0.40
codegen_flags: <defaults>
</compile_context>

<pallas_src>
import functools
import jax
import jax.numpy as jnp
from jax import lax
from jax.experimental import pallas as pl
from jax.experimental.pallas import tpu as pltpu

BN_EPS = 1e-5


def _round_up(x, m):
    return (x + m - 1) // m * m


def _pick_tile(total, max_tile, quantum=128):
    """Largest lane tile <= max_tile; prefers a multiple of 128 that divides `total` exactly
    (no output padding / no post-kernel slice). Falls back to max_tile (padded) otherwise."""
    if total <= max_tile:
        return total                      # single full-extent block (legal for any size)
    if total % quantum == 0:
        units = total // quantum
        for u in range(max(max_tile // quantum, 1), 0, -1):
            if units % u == 0:
                return u * quantum        # 128-multiple that divides total: zero padding
    return max_tile                       # rare: pad total up to a multiple of max_tile


def _stats_kernel(at_ref, wt_ref, stats_ref):
    # Conv tile on the MXU (bf16 operands, f32 accumulation), swapped orientation (Cout, t).
    conv = jnp.dot(wt_ref[...], at_ref[0], preferred_element_type=jnp.float32)   # (Cout, t)
    s1 = jnp.sum(conv, axis=1, keepdims=True)          # (Cout, 1) partial sum (XLU reduce)
    s2 = jnp.sum(conv * conv, axis=1, keepdims=True)   # (Cout, 1) partial sum of squares
    stats_ref[0, 0] = jnp.concatenate([s1, s2], axis=1)  # (Cout, 2), tiny
    # TODO(synk): E[x^2]-E[x]^2 in f32 can cancel if |mean| >> std; switch to Chan-style
    # centered per-tile partials (needs padding masks) if the conv output warrants it.


def _bn_apply_kernel(at_ref, wt_ref, scale_ref, shift_ref, o_ref):
    # Recompute the conv tile, then fused BN (scale/shift already fold mean/var/gamma/beta).
    conv = jnp.dot(wt_ref[...], at_ref[0], preferred_element_type=jnp.float32)   # (Cout, t)
    o_ref[0] = (conv * scale_ref[...] + shift_ref[...]).astype(o_ref.dtype)


@functools.partial(
    jax.jit,
    static_argnames=("kernel_size", "stride", "padding", "tile_hw", "tile_hw_stats", "out_dtype"),
)
def stem_forward(x_nchw, w_oihw, gamma, beta, *, kernel_size=3, stride=2, padding=1,
                 tile_hw=8192, tile_hw_stats=16384, out_dtype=jnp.float32):
    """x_nchw: (N, Cin, H, W) f32, w_oihw: (Cout, Cin, K, K). Returns (N, Cout, Ho, Wo)."""
    n, cin, h, w = x_nchw.shape
    cout = w_oihw.shape[0]
    k = kernel_size
    ho = (h + 2 * padding - k) // stride + 1
    wo = (w + 2 * padding - k) // stride + 1
    howo = ho * wo
    m_true = n * howo
    kk = k * k * cin
    kk_pad = _round_up(kk, 8)              # sublane-aligned contraction dim (27 -> 32)

    # Pass-2 lane tile over Ho*Wo; pass-1 (stats) tile is a larger exact multiple of it
    # (pass 1 has no (Cout, t) output block, so it can take much bigger tiles cheaply).
    t_hw = _pick_tile(howo, tile_hw)
    num_hw = pl.cdiv(howo, t_hw)
    howo_pad = num_hw * t_hw
    s_fac = 1
    for d in range(num_hw, 0, -1):
        if num_hw % d == 0 and d * t_hw <= tile_hw_stats:
            s_fac = d
            break
    t_hw_s = t_hw * s_fac
    num_hw_s = num_hw // s_fac

    # ---- glue: im2col, emitted directly as A^T (N, kk, Ho*Wo) in bf16 ----
    # TODO(synk): fuse patch extraction into the kernel (strided make_async_copy from the padded
    # NHWC input with memory_space=pl.ANY) so A^T is never materialized in HBM.
    x_nhwc = jnp.transpose(x_nchw, (0, 2, 3, 1))
    x_pad = jnp.pad(x_nhwc, ((0, 0), (padding, padding), (padding, padding), (0, 0)))
    patches = []
    for kh in range(k):
        for kw in range(k):
            patches.append(
                x_pad[:, kh:kh + stride * ho:stride, kw:kw + stride * wo:stride, :]
            )  # (N, Ho, Wo, Cin)
    # (N, Ho, Wo, Cin, K*K) -> (N, Ho*Wo, kk): kk ordering (cin, kh, kw) matches w.reshape below.
    a = jnp.stack(patches, axis=-1).astype(jnp.bfloat16).reshape(n, howo, kk)
    at = jnp.transpose(a, (0, 2, 1))                                     # (N, kk, Ho*Wo)
    at = jnp.pad(at, ((0, 0), (0, kk_pad - kk), (0, howo_pad - howo)))   # zeros: no effect

    # PyTorch weight (Cout, Cin, Kh, Kw) flattens row-major to exactly the (cin, kh, kw) order.
    wt = w_oihw.reshape(cout, kk).astype(jnp.bfloat16)
    wt = jnp.pad(wt, ((0, 0), (0, kk_pad - kk)))                         # (Cout, kk_pad)

    params = pltpu.CompilerParams(
        dimension_semantics=("parallel", "parallel"),       # (N, hw-tiles): megacore-friendly
        vmem_limit_bytes=32 * 1024 * 1024,                   # covers v5e's 16 MiB scoped default
    )

    # ---- pass 1: per-tile conv + partial BN stats ----
    stats = pl.pallas_call(
        _stats_kernel,
        out_shape=jax.ShapeDtypeStruct((n, num_hw_s, cout, 2), jnp.float32),
        grid=(n, num_hw_s),
        in_specs=[
            pl.BlockSpec((1, kk_pad, t_hw_s), lambda i, j: (i, 0, j)),
            pl.BlockSpec((cout, kk_pad), lambda i, j: (0, 0)),
        ],
        out_specs=pl.BlockSpec((1, 1, cout, 2), lambda i, j: (i, j, 0, 0)),
        compiler_params=params,
    )(at, wt)

    # Tiny global reduction + fold BN into per-channel scale/shift (f32). Zero-padded HoWo
    # columns contribute 0 to both sums; we divide by the true element count m_true.
    s1 = jnp.sum(stats[..., 0], axis=(0, 1))                 # (Cout,)
    s2 = jnp.sum(stats[..., 1], axis=(0, 1))                 # (Cout,)
    mean = s1 / m_true
    var = s2 / m_true - mean * mean                          # biased variance (training-mode BN)
    inv = lax.rsqrt(var + BN_EPS)
    g = gamma.astype(jnp.float32)
    b = beta.astype(jnp.float32)
    scale = (g * inv).reshape(cout, 1)
    shift = (b - mean * g * inv).reshape(cout, 1)

    # ---- pass 2: recompute conv tile + fused BN apply, output already in (N, Cout, Ho*Wo) ----
    out_full = pl.pallas_call(
        _bn_apply_kernel,
        out_shape=jax.ShapeDtypeStruct((n, cout, howo_pad), out_dtype),
        grid=(n, num_hw),
        in_specs=[
            pl.BlockSpec((1, kk_pad, t_hw), lambda i, j: (i, 0, j)),
            pl.BlockSpec((cout, kk_pad), lambda i, j: (0, 0)),
            pl.BlockSpec((cout, 1), lambda i, j: (0, 0)),
            pl.BlockSpec((cout, 1), lambda i, j: (0, 0)),
        ],
        out_specs=pl.BlockSpec((1, cout, t_hw), lambda i, j: (i, 0, j)),
        compiler_params=params,
    )(at, wt, scale, shift)

    # No transpose: output is already channel-major. Slice only if Ho*Wo needed lane padding
    # (never for the common sizes picked by _pick_tile).
    out = out_full if howo_pad == howo else out_full[:, :, :howo]
    return out.reshape(n, cout, ho, wo)


def _reference(x_nchw, w_oihw, gamma, beta):
    # Pure-JAX f32 reference: conv + training-mode batchnorm (matches PyTorch Stem forward).
    y = lax.conv_general_dilated(
        x_nchw, w_oihw, window_strides=(2, 2), padding=((1, 1), (1, 1)),
        dimension_numbers=("NCHW", "OIHW", "NCHW"),
    )
    mean = jnp.mean(y, axis=(0, 2, 3), keepdims=True)
    var = jnp.mean((y - mean) ** 2, axis=(0, 2, 3), keepdims=True)
    yhat = (y - mean) * lax.rsqrt(var + BN_EPS)
    return yhat * gamma.reshape(1, -1, 1, 1) + beta.reshape(1, -1, 1, 1)


if __name__ == "__main__":
    key = jax.random.PRNGKey(0)
    k_x, k_w, k_g, k_b = jax.random.split(key, 4)

    N, Cin, H, W = 2, 3, 16, 16
    Cout, K = 64, 3

    x = jax.random.normal(k_x, (N, Cin, H, W), dtype=jnp.float32)
    fan_in = Cin * K * K
    w = jax.random.normal(k_w, (Cout, Cin, K, K), dtype=jnp.float32) * (2.0 / fan_in) ** 0.5
    gamma = 1.0 + 0.1 * jax.random.normal(k_g, (Cout,), dtype=jnp.float32)
    beta = 0.1 * jax.random.normal(k_b, (Cout,), dtype=jnp.float32)

    out = stem_forward(x, w, gamma, beta)
    jax.block_until_ready(out)

    ref = _reference(x, w, gamma, beta)
    assert out.shape == (N, Cout, H // 2, W // 2), out.shape
    # Tolerance reflects the intentional bf16-operand MXU conv (f32 accumulation / f32 BN math).
    max_err = float(jnp.max(jnp.abs(out - ref)))
    assert jnp.allclose(out, ref, rtol=3e-2, atol=3e-2), max_err

    print("KERNEL_OK")
</pallas_src>

<mosaic_0001>
module attributes {stable_mosaic.version = 11 : i64} {
  func.func @_stats_kernel(%arg0: i32, %arg1: i32, %arg2: memref<1x32x64xbf16, #tpu.memory_space<vmem>>, %arg3: memref<64x32xbf16, #tpu.memory_space<vmem>>, %arg4: memref<1x1x64x2xf32, #tpu.memory_space<vmem>>) attributes {dimension_semantics = [#tpu.dimension_semantics<parallel>, #tpu.dimension_semantics<parallel>], iteration_bounds = array<i64: 2, 1>, scalar_prefetch = 0 : i64, scratch_operands = 0 : i64, tpu.core_type = #tpu.core_type<tc>, window_params = [{transform_indices = @transform_0, window_bounds = array<i64: 1, 32, 64>}, {pipeline_mode = #tpu.pipeline_mode<synchronous>, transform_indices = @transform_1, window_bounds = array<i64: 64, 32>}, {transform_indices = @transform_2, window_bounds = array<i64: 1, 1, 64, 2>}]} {
    %c0 = arith.constant 0 : index
    %c0_0 = arith.constant 0 : index
    %0 = vector.load %arg3[%c0, %c0_0] : memref<64x32xbf16, #tpu.memory_space<vmem>>, vector<64x32xbf16>
    %c0_1 = arith.constant 0 : index
    %c0_2 = arith.constant 0 : index
    %c0_3 = arith.constant 0 : index
    %1 = vector.load %arg2[%c0_1, %c0_2, %c0_3] : memref<1x32x64xbf16, #tpu.memory_space<vmem>>, vector<1x32x64xbf16>
    %2 = vector.shape_cast %1 : vector<1x32x64xbf16> to vector<32x64xbf16>
    %cst = arith.constant dense<0.000000e+00> : vector<64x64xf32>
    %3 = tpu.matmul %0, %2, %cst {dimension_numbers = #tpu.dot_dimension_numbers<[1], [0], [0], [1], [0, 0, 1, 1], [], []>} : vector<64x32xbf16>, vector<32x64xbf16>, vector<64x64xf32> -> vector<64x64xf32>
    %cst_4 = arith.constant dense<0.000000e+00> : vector<64xf32>
    %4 = vector.multi_reduction <add>, %3, %cst_4 [1] : vector<64x64xf32> to vector<64xf32>
    %5 = vector.shape_cast %4 : vector<64xf32> to vector<64x1xf32>
    %6 = arith.mulf %3, %3 : vector<64x64xf32>
    %cst_5 = arith.constant dense<0.000000e+00> : vector<64xf32>
    %7 = vector.multi_reduction <add>, %6, %cst_5 [1] : vector<64x64xf32> to vector<64xf32>
    %8 = vector.shape_cast %7 : vector<64xf32> to vector<64x1xf32>
    %9 = tpu.concatenate %5, %8 in 1 : vector<64x1xf32>, vector<64x1xf32> -> vector<64x2xf32>
    %c0_6 = arith.constant 0 : index
    %c0_7 = arith.constant 0 : index
    %c0_8 = arith.constant 0 : index
    %c0_9 = arith.constant 0 : index
    %10 = vector.load %arg4[%c0_6, %c0_7, %c0_8, %c0_9] : memref<1x1x64x2xf32, #tpu.memory_space<vmem>>, vector<1x1x64x2xf32>
    %11 = vector.shape_cast %10 : vector<1x1x64x2xf32> to vector<64x2xf32>
    %12 = vector.shape_cast %9 : vector<64x2xf32> to vector<1x1x64x2xf32>
    tpu.vector_store %arg4[%c0_6, %c0_7, %c0_8, %c0_9], %12 {strides = array<i32>} : memref<1x1x64x2xf32, #tpu.memory_space<vmem>>, vector<1x1x64x2xf32>,
    return
  }
  func.func @transform_0(%arg0: i32, %arg1: i32) -> (i32, i32, i32) {
    %c0_i32 = arith.constant 0 : i32
    %c0_i32_0 = arith.constant 0 : i32
    return %arg0, %c0_i32, %arg1 : i32, i32, i32
  }
  func.func @transform_1(%arg0: i32, %arg1: i32) -> (i32, i32) {
    %c0_i32 = arith.constant 0 : i32
    %c0_i32_0 = arith.constant 0 : i32
    %c0_i32_1 = arith.constant 0 : i32
    return %c0_i32, %c0_i32_0 : i32, i32
  }
  func.func @transform_2(%arg0: i32, %arg1: i32) -> (i32, i32, i32, i32) {
    %c0_i32 = arith.constant 0 : i32
    %c0_i32_0 = arith.constant 0 : i32
    %c0_i32_1 = arith.constant 0 : i32
    return %arg0, %arg1, %c0_i32, %c0_i32_0 : i32, i32, i32, i32
  }
}

module attributes {stable_mosaic.version = 11 : i64} {
  func.func @_bn_apply_kernel(%arg0: i32, %arg1: i32, %arg2: memref<1x32x64xbf16, #tpu.memory_space<vmem>>, %arg3: memref<64x32xbf16, #tpu.memory_space<vmem>>, %arg4: memref<64x1xf32, #tpu.memory_space<vmem>>, %arg5: memref<64x1xf32, #tpu.memory_space<vmem>>, %arg6: memref<1x64x64xf32, #tpu.memory_space<vmem>>) attributes {dimension_semantics = [#tpu.dimension_semantics<parallel>, #tpu.dimension_semantics<parallel>], iteration_bounds = array<i64: 2, 1>, scalar_prefetch = 0 : i64, scratch_operands = 0 : i64, tpu.core_type = #tpu.core_type<tc>, window_params = [{transform_indices = @transform_0, window_bounds = array<i64: 1, 32, 64>}, {pipeline_mode = #tpu.pipeline_mode<synchronous>, transform_indices = @transform_1, window_bounds = array<i64: 64, 32>}, {pipeline_mode = #tpu.pipeline_mode<synchronous>, transform_indices = @transform_2, window_bounds = array<i64: 64, 1>}, {pipeline_mode = #tpu.pipeline_mode<synchronous>, transform_indices = @transform_3, window_bounds = array<i64: 64, 1>}, {transform_indices = @transform_4, window_bounds = array<i64: 1, 64, 64>}]} {
    %c0 = arith.constant 0 : index
    %c0_0 = arith.constant 0 : index
    %0 = vector.load %arg3[%c0, %c0_0] : memref<64x32xbf16, #tpu.memory_space<vmem>>, vector<64x32xbf16>
    %c0_1 = arith.constant 0 : index
    %c0_2 = arith.constant 0 : index
    %c0_3 = arith.constant 0 : index
    %1 = vector.load %arg2[%c0_1, %c0_2, %c0_3] : memref<1x32x64xbf16, #tpu.memory_space<vmem>>, vector<1x32x64xbf16>
    %2 = vector.shape_cast %1 : vector<1x32x64xbf16> to vector<32x64xbf16>
    %cst = arith.constant dense<0.000000e+00> : vector<64x64xf32>
    %3 = tpu.matmul %0, %2, %cst {dimension_numbers = #tpu.dot_dimension_numbers<[1], [0], [0], [1], [0, 0, 1, 1], [], []>} : vector<64x32xbf16>, vector<32x64xbf16>, vector<64x64xf32> -> vector<64x64xf32>
    %c0_4 = arith.constant 0 : index
    %c0_5 = arith.constant 0 : index
    %4 = vector.load %arg4[%c0_4, %c0_5] : memref<64x1xf32, #tpu.memory_space<vmem>>, vector<64x1xf32>
    %5 = vector.broadcast %4 : vector<64x1xf32> to vector<64x64xf32>
    %6 = arith.mulf %3, %5 : vector<64x64xf32>
    %c0_6 = arith.constant 0 : index
    %c0_7 = arith.constant 0 : index
    %7 = vector.load %arg5[%c0_6, %c0_7] : memref<64x1xf32, #tpu.memory_space<vmem>>, vector<64x1xf32>
    %8 = vector.broadcast %7 : vector<64x1xf32> to vector<64x64xf32>
    %9 = arith.addf %6, %8 : vector<64x64xf32>
    %c0_8 = arith.constant 0 : index
    %c0_9 = arith.constant 0 : index
    %c0_10 = arith.constant 0 : index
    %10 = vector.load %arg6[%c0_8, %c0_9, %c0_10] : memref<1x64x64xf32, #tpu.memory_space<vmem>>, vector<1x64x64xf32>
    %11 = vector.shape_cast %10 : vector<1x64x64xf32> to vector<64x64xf32>
    %12 = vector.shape_cast %9 : vector<64x64xf32> to vector<1x64x64xf32>
    tpu.vector_store %arg6[%c0_8, %c0_9, %c0_10], %12 {strides = array<i32>} : memref<1x64x64xf32, #tpu.memory_space<vmem>>, vector<1x64x64xf32>,
    return
  }
  func.func @transform_0(%arg0: i32, %arg1: i32) -> (i32, i32, i32) {
    %c0_i32 = arith.constant 0 : i32
    %c0_i32_0 = arith.constant 0 : i32
    return %arg0, %c0_i32, %arg1 : i32, i32, i32
  }
  func.func @transform_1(%arg0: i32, %arg1: i32) -> (i32, i32) {
    %c0_i32 = arith.constant 0 : i32
    %c0_i32_0 = arith.constant 0 : i32
    %c0_i32_1 = arith.constant 0 : i32
    return %c0_i32, %c0_i32_0 : i32, i32
  }
  func.func @transform_2(%arg0: i32, %arg1: i32) -> (i32, i32) {
    %c0_i32 = arith.constant 0 : i32
    %c0_i32_0 = arith.constant 0 : i32
    %c0_i32_1 = arith.constant 0 : i32
    return %c0_i32, %c0_i32_0 : i32, i32
  }
  func.func @transform_3(%arg0: i32, %arg1: i32) -> (i32, i32) {
    %c0_i32 = arith.constant 0 : i32
    %c0_i32_0 = arith.constant 0 : i32
    %c0_i32_1 = arith.constant 0 : i32
    return %c0_i32, %c0_i32_0 : i32, i32
  }
  func.func @transform_4(%arg0: i32, %arg1: i32) -> (i32, i32, i32) {
    %c0_i32 = arith.constant 0 : i32
    %c0_i32_0 = arith.constant 0 : i32
    return %arg0, %c0_i32, %arg1 : i32, i32, i32
  }
}

</mosaic_0001>

<bundles_post_ra>
// kernel: stem_forward.3
= control target key start
LH: loop header
LB: loop body
LE: loop exit
PB: predicated region body
PF: predicated region fallthrough
CT: control target
= control target key end

     0   :  { %s684_s15 = smov 0   ;;  %s686_s16 = smov 0   ;;  %s793_s0 = inlined_call_operand.vmem [shape: bf16[2,32,64], index: 0, kind: input, shape index: {}]   ;;  %s794_s1 = inlined_call_operand.vmem [shape: bf16[64,32], index: 1, kind: input, shape index: {}]   ;;  %s795_s2 = inlined_call_operand.vmem [shape: f32[64,1], index: 2, kind: input, shape index: {}]   ;;  %s796_s3 = inlined_call_operand.vmem [shape: f32[64,1], index: 3, kind: input, shape index: {}]   ;;  %s797_s4 = inlined_call_operand.vmem [shape: f32[2,64,64], index: 4, kind: output, shape index: {}]  }
   0x1   :  { %s688_s17 = smov 0  }
   0x2 LB: > { %s26_s18 = sadd.s32 1, %s652_s16  ;;  %p560_p0 = scmp.ge.s32.totalorder %s656_s17, 1  ;;  %s656_s17 = sphi %s688_s17, %s14_s17   ;;  %s652_s16 = sphi %s686_s16, %s799_s16   ;;  %s648_s15 = sphi %s684_s15, %s798_s15  }
   0x3   : > { %p28_p1 = scmp.ge.s32.totalorder %s26_s18, 2  ;;  %p181_p2 = scmp.lt.s32.totalorder %s656_s17, 3 }
   0x5   : > { %s801_s18 = smov (%p28_p1, %s26_s18), 0  ;;  %p182_p3 = pnand %p560_p0, %p181_p2 }
   0x6   : > { %p213_p4 = scmp.lt.s32.totalorder (!%p182_p3), %s648_s15, 1 }
   0x7   : > { %185 = sbr.rel (%p182_p3) target bundleno = 228 (0xe4), region = 36 }
   0xc   : > { %v630_v0 = vld [vmem:[%s794_s1] sm:$0xff]   ;;  %vm274_vm0 = vcmask 261120   ;;  %v631_v1 = vld [vmem:[%s794_s1 + $0x10] sm:$0xff]   ;;  %s803_s15 = smov (!%p213_p4, %s648_s15), 1  ;;  %v658_v2 = vmov 0   ;;  %v355_v7 = vld [vmem:[%s795_s2 + $0x18] sm:$0xff] }
   0xd   : > { %589 = vmatprep.mubr.msk.bf16.mxu0 %vm274_vm0, %v630_v0  ;;  %593 = vmatprep.mubr.msk.bf16.mxu1 %vm274_vm0, %v631_v1  ;;  %s577_s23 = sshll.u32 %s803_s15, 4  ;;  %v354_v3 = vld [vmem:[%s795_s2 + $0x10] sm:$0xff]  ;;  %v352_v4 = vld [vmem:[%s795_s2] sm:$0xff]  ;;  %v353_v8 = vld [vmem:[%s795_s2 + $0x8] sm:$0xff]  ;;  %s578_s19 = sshll.u32 %s803_s15, 6  ;;  %vm464_vm1 = vcmask 523264  }
   0xe   : > { %627 = vset.pattern.permute.xlu1 %v658_v2  ;;  %626 = vset.pattern.permute.xlu0 %v658_v2  ;;  %s220_s30 = scalar_lea.vmem %s793_s0, %s577_s23  ;;  %v632_v9 = vld [vmem:[%s794_s1 + $0x8] sm:$0xff]   ;;  %v633_v10 = vld [vmem:[%s794_s1 + $0x18] sm:$0xff]   ;;  %v356_v12 = vld [vmem:[%s795_s2 + $0x20] sm:$0xff]  ;;  %s228_s22 = scalar_lea.vmem %s797_s4, %s578_s19 }
   0xf   : > { %372 = vperm.xlu1 %627, %v354_v3   ;;  %362 = vperm.xlu0 %626, %v352_v4   ;;  %v628_v5 = vld [vmem:[%s220_s30 + $0x8] sm:$0xff]   ;;  %v629_v6 = vld [vmem:[%s220_s30] sm:$0xff]   ;;  %v359_v13 = vld [vmem:[%s795_s2 + $0x38] sm:$0xff] }
  0x10   : > { %585 = vmatprep.subr.bf16.mxu0 %v628_v5  ;;  %597 = vmatprep.subr.bf16.mxu1 %v628_v5  ;;  %v357_v11 = vld [vmem:[%s795_s2 + $0x28] sm:$0xff]  ;;  %v358_v14 = vld [vmem:[%s795_s2 + $0x30] sm:$0xff]  ;;  %v408_v16 = vld [vmem:[%s796_s3] sm:$0xff] }
  0x11   : > { %586 = vmatpush3.bf16.msra.mxu0 %v628_v5  ;;  %599 = vmatpush3.bf16.msra.mxu1 %v628_v5  ;;  %v409_v15 = vld [vmem:[%s796_s3 + $0x8] sm:$0xff]  ;;  %v411_v17 = vld [vmem:[%s796_s3 + $0x18] sm:$0xff]  ;;  %v410_v18 = vld [vmem:[%s796_s3 + $0x10] sm:$0xff] }
  0x12   : > { %587 = vmatprep.subr.bf16.mxu0 %v629_v6  ;;  %598 = vmatprep.subr.bf16.mxu1 %v629_v6  ;;  %v413_v19 = vld [vmem:[%s796_s3 + $0x28] sm:$0xff]  ;;  %v412_v20 = vld [vmem:[%s796_s3 + $0x20] sm:$0xff]  ;;  %v415_v21 = vld [vmem:[%s796_s3 + $0x38] sm:$0xff] }
  0x13   : > { %377 = vperm.xlu1 %627, %v355_v7   ;;  %367 = vperm.xlu0 %626, %v353_v8   ;;  %v414_v22 = vld [vmem:[%s796_s3 + $0x30] sm:$0xff] }
  0x15   : > { %588 = vmatpush3.bf16.msra.mxu0 %v629_v6  ;;  %600 = vmatpush3.bf16.msra.mxu1 %v629_v6 }
  0x17   : > { %387 = vperm.xlu1 %627, %v357_v11   ;;  %382 = vperm.xlu0 %626, %v356_v12  }
  0x18   : > { %590 = vmatmul.mubr.msk.bf16.vlgmr.msra.gmra.mxu0 %vm274_vm0, %v632_v9  ;;  %594 = vmatmul.mubr.msk.bf16.vlgmr.msra.gmra.mxu1 %vm274_vm0, %v633_v10 }
  0x1b   : > { %397 = vperm.xlu1 %627, %v359_v13   ;;  %392 = vperm.xlu0 %626, %v358_v14  }
  0x1f   : > { %423 = vperm.xlu1 %627, %v409_v15   ;;  %418 = vperm.xlu0 %626, %v408_v16  }
  0x23   : > { %433 = vperm.xlu1 %627, %v411_v17   ;;  %428 = vperm.xlu0 %626, %v410_v18  }
  0x27   : > { %443 = vperm.xlu1 %627, %v413_v19   ;;  %438 = vperm.xlu0 %626, %v412_v20  }
  0x2b   : > { %453 = vperm.xlu1 %627, %v415_v21   ;;  %448 = vperm.xlu0 %626, %v414_v22  }
  0x8a   : > { %v363_v23 = vpop.permute.xlu0 %362  ;;  %v373_v24 = vpop.permute.xlu1 %372 }
  0x8e   : > { %v368_v25 = vpop.permute.xlu0 %367  ;;  %v378_v26 = vpop.permute.xlu1 %377 }
  0x92   : > { %v383_v27 = vpop.permute.xlu0 %382  ;;  %v388_v28 = vpop.permute.xlu1 %387 }
  0x96   : > { %v393_v29 = vpop.permute.xlu0 %392  ;;  %v398_v30 = vpop.permute.xlu1 %397 }
  0x9a   : > { %v419_v31 = vpop.permute.xlu0 %418  ;;  %v424_v32 = vpop.permute.xlu1 %423 }
  0x9e   : > { %v429_v33 = vpop.permute.xlu0 %428  ;;  %v434_v34 = vpop.permute.xlu1 %433 }
  0xa2   : > { %v439_v35 = vpop.permute.xlu0 %438  ;;  %v444_v36 = vpop.permute.xlu1 %443 }
  0xa6   : > { %v449_v39 = vpop.permute.xlu0 %448  ;;  %v454_v50 = vpop.permute.xlu1 %453 }
  0xd8   : > { %v591_v37 = vpop.f32.mrf.mxu0  ;;  %v595_v38 = vpop.f32.mrf.mxu1 }
  0xd9   : > { %v402_v40 = vmul.f32 %v591_v37, %v373_v24  ;;  %v406_v41 = vmul.f32 %v595_v38, %v393_v29 }
  0xda   : > { %v321_v42 = vpop.f32.mrf.mxu0  ;;  %v337_v43 = vpop.f32.mrf.mxu1 }
  0xdb   : > { %v458_v44 = vadd.f32 %v429_v33, %v402_v40  ;;  %v462_v45 = vadd.f32 %v449_v39, %v406_v41  ;;  %v400_v46 = vmul.f32 %v363_v23, %v321_v42  ;;  %v404_v47 = vmul.f32 %v383_v27, %v337_v43 }
  0xdc   : > { %v592_v48 = vpop.f32.mrf.mxu0  ;;  %v596_v49 = vpop.f32.mrf.mxu1 }
  0xdd   : > { %467 = vst.msk [vmem:[%s228_s22 + $0x10] sm:$0xff] %vm464_vm1, %v458_v44  ;;  %471 = vst.msk [vmem:[%s228_s22 + $0x30] sm:$0xff] %vm464_vm1, %v462_v45  ;;  %v456_v51 = vadd.f32 %v419_v31, %v400_v46  ;;  %v460_v52 = vadd.f32 %v439_v35, %v404_v47  ;;  %v403_v53 = vmul.f32 %v592_v48, %v378_v26 }
  0xde   : > { %v407_v54 = vmul.f32 %v596_v49, %v398_v30  ;;  %v324_v55 = vpop.f32.mrf.mxu0  ;;  %v340_v56 = vpop.f32.mrf.mxu1 }
  0xdf   : > { %465 = vst.msk [vmem:[%s228_s22] sm:$0xff] %vm464_vm1, %v456_v51  ;;  %469 = vst.msk [vmem:[%s228_s22 + $0x20] sm:$0xff] %vm464_vm1, %v460_v52  ;;  %v459_v57 = vadd.f32 %v434_v34, %v403_v53  ;;  %v401_v59 = vmul.f32 %v368_v25, %v324_v55  ;;  %v405_v60 = vmul.f32 %v388_v28, %v340_v56 }
  0xe0   : > { %v463_v58 = vadd.f32 %v454_v50, %v407_v54 }
  0xe1   : > { %468 = vst.msk [vmem:[%s228_s22 + $0x18] sm:$0xff] %vm464_vm1, %v459_v57  ;;  %v457_v61 = vadd.f32 %v424_v32, %v401_v59  ;;  %v461_v62 = vadd.f32 %v444_v36, %v405_v60 }
  0xe2   : > { %472 = vst.msk [vmem:[%s228_s22 + $0x38] sm:$0xff] %vm464_vm1, %v463_v58 }
  0xe3   : > { %466 = vst.msk [vmem:[%s228_s22 + $0x8] sm:$0xff] %vm464_vm1, %v457_v61  ;;  %470 = vst.msk [vmem:[%s228_s22 + $0x28] sm:$0xff] %vm464_vm1, %v461_v62 }
  0xe4 PF: > { %s14_s17 = sadd.s32 1, %s656_s17   ;;  %s798_s15 = smov %s652_s16 }
  0xe5   : > { %p11_p5 = scmp.ge.s32.totalorder %s14_s17, 4   ;;  %s799_s16 = smov %s801_s18 }
  0xe7   :  { %13 = sbr.rel (!%p11_p5) target bundleno = 2 (0x2), region = 66 }

// kernel: stem_forward.2
= control target key start
LH: loop header
LB: loop body
LE: loop exit
PB: predicated region body
PF: predicated region fallthrough
CT: control target
= control target key end

     0   :  { %s578_s9 = smov 0   ;;  %s580_s10 = smov 0   ;;  %s663_s0 = inlined_call_operand.vmem [shape: bf16[2,32,64], index: 0, kind: input, shape index: {}]   ;;  %s664_s1 = inlined_call_operand.vmem [shape: bf16[64,32], index: 1, kind: input, shape index: {}]   ;;  %s665_s2 = inlined_call_operand.vmem [shape: f32[2,1,64,2], index: 2, kind: output, shape index: {}]  }
   0x1   :  { %s582_s11 = smov 0  }
   0x2 LB: > { %s24_s12 = sadd.s32 1, %s557_s10  ;;  %p468_p0 = scmp.ge.s32.totalorder %s561_s11, 1  ;;  %s561_s11 = sphi %s582_s11, %s12_s11   ;;  %s557_s10 = sphi %s580_s10, %s667_s10   ;;  %s553_s9 = sphi %s578_s9, %s666_s9  }
   0x3   : > { %p26_p1 = scmp.ge.s32.totalorder %s24_s12, 2  ;;  %p131_p2 = scmp.lt.s32.totalorder %s561_s11, 3 }
   0x5   : > { %s669_s12 = smov (%p26_p1, %s24_s12), 0  ;;  %p132_p3 = pnand %p468_p0, %p131_p2 }
   0x6   : > { %p160_p4 = scmp.lt.s32.totalorder (!%p132_p3), %s553_s9, 1 }
   0x7   : > { %135 = sbr.rel (%p132_p3) target bundleno = 386 (0x182), region = 28 }
   0xc   : > { %v535_v0 = vld [vmem:[%s664_s1] sm:$0xff]   ;;  %vm222_vm0 = vcmask 261120   ;;  %v536_v1 = vld [vmem:[%s664_s1 + $0x10] sm:$0xff]   ;;  %s671_s9 = smov (!%p160_p4, %s553_s9), 1  ;;  %v537_v4 = vld [vmem:[%s664_s1 + $0x8] sm:$0xff]   ;;  %vm300_vm1 = vcmask 523264  }
   0xd   : > { %497 = vmatprep.mubr.msk.bf16.mxu0 %vm222_vm0, %v535_v0  ;;  %501 = vmatprep.mubr.msk.bf16.mxu1 %vm222_vm0, %v536_v1  ;;  %s485_s17 = sshll.u32 %s671_s9, 4  ;;  %v538_v5 = vld [vmem:[%s664_s1 + $0x18] sm:$0xff]   ;;  %s486_s25 = sshll.u32 %s671_s9, 6  ;;  %vm357_vm2 = vcmask 7168   ;;  %vm366_vm3 = vcmask 15360  }
   0xe   : > { %s167_s20 = scalar_lea.vmem %s663_s0, %s485_s17  ;;  %s176_s28 = scalar_lea.vmem %s665_s2, %s486_s25 }
   0xf   : > { %v533_v2 = vld [vmem:[%s167_s20 + $0x8] sm:$0xff]   ;;  %v534_v3 = vld [vmem:[%s167_s20] sm:$0xff]  }
  0x10   : > { %493 = vmatprep.subr.bf16.mxu0 %v533_v2  ;;  %505 = vmatprep.subr.bf16.mxu1 %v533_v2 }
  0x11   : > { %494 = vmatpush3.bf16.msra.mxu0 %v533_v2  ;;  %507 = vmatpush3.bf16.msra.mxu1 %v533_v2 }
  0x12   : > { %495 = vmatprep.subr.bf16.mxu0 %v534_v3  ;;  %506 = vmatprep.subr.bf16.mxu1 %v534_v3 }
  0x15   : > { %496 = vmatpush3.bf16.msra.mxu0 %v534_v3  ;;  %508 = vmatpush3.bf16.msra.mxu1 %v534_v3 }
  0x18   : > { %498 = vmatmul.mubr.msk.bf16.vlgmr.msra.gmra.mxu0 %vm222_vm0, %v537_v4  ;;  %502 = vmatmul.mubr.msk.bf16.vlgmr.msra.gmra.mxu1 %vm222_vm0, %v538_v5 }
  0xd8   : > { %v499_v6 = vpop.f32.mrf.mxu0  ;;  %v503_v7 = vpop.f32.mrf.mxu1 }
  0xd9   : > { %v319_v8 = vsel %vm300_vm1, %v503_v7, 0.0  ;;  %v307_v9 = vsel %vm300_vm1, %v499_v6, 0.0  ;;  %v327_v16 = vmul.f32 %v499_v6, %v499_v6  ;;  %v331_v32 = vmul.f32 %v503_v7, %v503_v7 }
  0xda   : > { %320 = vadd.xlane.f32.xlu0 %v319_v8  ;;  %v285_v10 = vpop.f32.mrf.mxu1  ;;  %308 = vadd.xlane.f32.xlu1 %v307_v9  ;;  %v269_v11 = vpop.f32.mrf.mxu0 }
  0xdb   : > { %v301_v13 = vsel %vm300_vm1, %v269_v11, 0.0  ;;  %v313_v17 = vsel %vm300_vm1, %v285_v10, 0.0  ;;  %v325_v20 = vmul.f32 %v269_v11, %v269_v11  ;;  %v339_v22 = vsel %vm300_vm1, %v327_v16, 0.0 }
  0xdc   : > { %v500_v12 = vpop.f32.mrf.mxu0  ;;  %v504_v15 = vpop.f32.mrf.mxu1  ;;  %v329_v25 = vmul.f32 %v285_v10, %v285_v10  ;;  %v351_v37 = vsel %vm300_vm1, %v331_v32, 0.0 }
  0xdd   : > { %v310_v14 = vsel %vm300_vm1, %v500_v12, 0.0  ;;  %v322_v18 = vsel %vm300_vm1, %v504_v15, 0.0  ;;  %v328_v21 = vmul.f32 %v500_v12, %v500_v12  ;;  %v333_v27 = vsel %vm300_vm1, %v325_v20, 0.0 }
  0xde   : > { %302 = vadd.xlane.f32.xlu0 %v301_v13  ;;  %311 = vadd.xlane.f32.xlu1 %v310_v14  ;;  %v288_v19 = vpop.f32.mrf.mxu1  ;;  %v272_v24 = vpop.f32.mrf.mxu0  ;;  %v345_v30 = vsel %vm300_vm1, %v329_v25, 0.0  ;;  %v332_v33 = vmul.f32 %v504_v15, %v504_v15 }
  0xdf   : > { %v316_v23 = vsel %vm300_vm1, %v288_v19, 0.0  ;;  %v326_v26 = vmul.f32 %v272_v24, %v272_v24  ;;  %v342_v28 = vsel %vm300_vm1, %v328_v21, 0.0  ;;  %v330_v29 = vmul.f32 %v288_v19, %v288_v19 }
  0xe0   : > { %v304_v35 = vsel %vm300_vm1, %v272_v24, 0.0  ;;  %v354_v36 = vsel %vm300_vm1, %v332_v33, 0.0 }
  0xe1   : > { %v336_v31 = vsel %vm300_vm1, %v326_v26, 0.0  ;;  %v348_v34 = vsel %vm300_vm1, %v330_v29, 0.0 }
  0xe2   : > { %314 = vadd.xlane.f32.xlu0 %v313_v17  ;;  %323 = vadd.xlane.f32.xlu1 %v322_v18 }
  0xe6   : > { %340 = vadd.xlane.f32.xlu0 %v339_v22  ;;  %317 = vadd.xlane.f32.xlu1 %v316_v23 }
  0xea   : > { %334 = vadd.xlane.f32.xlu0 %v333_v27  ;;  %343 = vadd.xlane.f32.xlu1 %v342_v28 }
  0xee   : > { %346 = vadd.xlane.f32.xlu0 %v345_v30  ;;  %337 = vadd.xlane.f32.xlu1 %v336_v31 }
  0xf2   : > { %349 = vadd.xlane.f32.xlu1 %v348_v34  ;;  %305 = vadd.xlane.f32.xlu0 %v304_v35 }
  0xf6   : > { %355 = vadd.xlane.f32.xlu1 %v354_v36  ;;  %352 = vadd.xlane.f32.xlu0 %v351_v37 }
 0x163   : > { %v321_v38 = vpop.xlane.xlu0 %320  ;;  %v309_v39 = vpop.xlane.xlu1 %308 }
 0x167   : > { %v303_v40 = vpop.xlane.xlu0 %302  ;;  %v312_v41 = vpop.xlane.xlu1 %311 }
 0x16b   : > { %v315_v42 = vpop.xlane.xlu0 %314  ;;  %v324_v43 = vpop.xlane.xlu1 %323 }
 0x16f   : > { %v341_v44 = vpop.xlane.xlu0 %340  ;;  %v318_v45 = vpop.xlane.xlu1 %317 }
 0x170   : > { %v360_v46 = vsel %vm357_vm2, %v309_v39, %v341_v44 }
 0x171   : > { %369 = vst.msk [vmem:[%s176_s28 + $0x10] sm:$0xff] %vm366_vm3, %v360_v46 }
 0x173   : > { %v335_v47 = vpop.xlane.xlu0 %334  ;;  %v344_v48 = vpop.xlane.xlu1 %343 }
 0x174   : > { %v358_v49 = vsel %vm357_vm2, %v303_v40, %v335_v47  ;;  %v361_v50 = vsel %vm357_vm2, %v312_v41, %v344_v48 }
 0x175   : > { %367 = vst.msk [vmem:[%s176_s28] sm:$0xff] %vm366_vm3, %v358_v49  ;;  %370 = vst.msk [vmem:[%s176_s28 + $0x18] sm:$0xff] %vm366_vm3, %v361_v50 }
 0x177   : > { %v347_v51 = vpop.xlane.xlu0 %346  ;;  %v338_v52 = vpop.xlane.xlu1 %337 }
 0x178   : > { %v362_v53 = vsel %vm357_vm2, %v315_v42, %v347_v51 }
 0x179   : > { %371 = vst.msk [vmem:[%s176_s28 + $0x20] sm:$0xff] %vm366_vm3, %v362_v53 }
 0x17b   : > { %v350_v54 = vpop.xlane.xlu1 %349  ;;  %v306_v55 = vpop.xlane.xlu0 %305 }
 0x17c   : > { %v363_v56 = vsel %vm357_vm2, %v318_v45, %v350_v54  ;;  %v359_v57 = vsel %vm357_vm2, %v306_v55, %v338_v52 }
 0x17d   : > { %372 = vst.msk [vmem:[%s176_s28 + $0x28] sm:$0xff] %vm366_vm3, %v363_v56  ;;  %368 = vst.msk [vmem:[%s176_s28 + $0x8] sm:$0xff] %vm366_vm3, %v359_v57 }
 0x17f   : > { %v356_v58 = vpop.xlane.xlu1 %355  ;;  %v353_v59 = vpop.xlane.xlu0 %352 }
 0x180   : > { %v365_v60 = vsel %vm357_vm2, %v324_v43, %v356_v58  ;;  %v364_v61 = vsel %vm357_vm2, %v321_v38, %v353_v59 }
 0x181   : > { %374 = vst.msk [vmem:[%s176_s28 + $0x38] sm:$0xff] %vm366_vm3, %v365_v60  ;;  %373 = vst.msk [vmem:[%s176_s28 + $0x30] sm:$0xff] %vm366_vm3, %v364_v61 }
 0x182 PF: > { %s12_s11 = sadd.s32 1, %s561_s11   ;;  %s666_s9 = smov %s557_s10 }
 0x183   : > { %p9_p5 = scmp.ge.s32.totalorder %s12_s11, 4   ;;  %s667_s10 = smov %s669_s12 }
 0x185   :  { %11 = sbr.rel (!%p9_p5) target bundleno = 2 (0x2), region = 58 }

</bundles_post_ra>
